<compile_context>
chip_gen: v6e
topology: v6e:2x2x1
jax: 0.10.0
libtpu: 0.0.40
codegen_flags: <defaults>
</compile_context>

<pallas_src>
import functools

import jax
import jax.numpy as jnp
from jax.experimental import pallas as pl
from jax.experimental.pallas import tpu as pltpu


D_IN = 300      # Linear(300, 512)
D_HID = 512
EB = 128        # eb_size (default)
ITEMS = 20      # hard-coded in forward reshape(-1, l, 20, eb_size)


def _round_up(a, b):
    return (a + b - 1) // b * b


def gettext_kernel(x_ref, w1_ref, b1_ref, w2_ref, shift_ref, mask_ref, o_ref,
                   *, n_rows):
    # x_ref:    (TM, 300) f32       w1_ref: (300, 512) bf16
    # b1_ref:   (1, 512)  f32       w2_ref: (512, EB)  bf16 (BN scale folded in)
    # shift_ref:(1, EB)   f32       mask_ref: (TM, 1)  f32
    # o_ref:    (TM, EB)  f32
    tm = o_ref.shape[0]

    # Cast x to bf16 in-kernel (VPU work hidden under the MXU) instead of a
    # separate wrapper-side HBM pass.
    x = x_ref[...].astype(jnp.bfloat16)
    h = jnp.dot(x, w1_ref[...], preferred_element_type=jnp.float32)
    h = jnp.maximum(h + b1_ref[...], 0.0)          # ReLU (Dropout = identity, eval)
    y = jnp.dot(h.astype(jnp.bfloat16), w2_ref[...],
                preferred_element_type=jnp.float32)
    y = y + shift_ref[...]                         # folded BatchNorm1d (eval)

    # Ragged last tile: rows >= n_rows are undefined OOB reads; zero their mask
    # so no NaN/Inf enters the arithmetic (their stores are clipped at the
    # array bound anyway).
    row = pl.program_id(0) * tm + jax.lax.broadcasted_iota(jnp.int32, (tm, 1), 0)
    m = jnp.where(row < n_rows, mask_ref[...], 0.0)
    o_ref[...] = (y * m).astype(o_ref.dtype)


@functools.partial(jax.jit, static_argnames=("tm",))
def gettext_forward(x, outfit_mask, params, tm=4096):
    """x: (B, L, 20, 300) f32; outfit_mask: (B, L, 20) f32."""
    B, L, I, D = x.shape
    assert D == D_IN and I == ITEMS
    assert tm % 16 == 0
    N = B * L * I

    w1, b1, w2, gamma, beta, run_mean, run_var = params
    eps = 1e-5
    inv_std = jax.lax.rsqrt(run_var + eps)
    scale = gamma * inv_std                                   # (EB,)
    shift = (beta - run_mean * scale).reshape(1, EB)          # f32, applied on VPU

    # Fold BN scale into the second linear layer; weights to bf16 (MXU-native).
    w1_bf = w1.astype(jnp.bfloat16)                           # (300, 512)
    w2_bf = (w2 * scale[None, :]).astype(jnp.bfloat16)        # (512, EB)
    b1_2 = b1.reshape(1, D_HID)                               # f32

    # Row tiling: no padding and no wrapper-side dtype cast of x.  Clamp the
    # tile to ~ceil(N/2) so the parallel grid has >= 2 programs (v7x dual TC),
    # cap it at `tm` (default 4096 keeps per-step VMEM inside v7x's 64 MiB).
    half = _round_up(pl.cdiv(N, 2), 16)
    tm_eff = max(16, min(tm, half))
    grid = (pl.cdiv(N, tm_eff),)

    x2 = x.reshape(N, D_IN)                                   # free reshape, stays f32
    m2 = outfit_mask.reshape(N, 1).astype(jnp.float32)

    kernel = functools.partial(gettext_kernel, n_rows=N)
    out = pl.pallas_call(
        kernel,
        out_shape=jax.ShapeDtypeStruct((N, EB), jnp.float32),
        grid_spec=pltpu.PrefetchScalarGridSpec(
            num_scalar_prefetch=0,
            grid=grid,
            in_specs=[
                pl.BlockSpec((tm_eff, D_IN), lambda i: (i, 0)),    # x rows (f32)
                pl.BlockSpec((D_IN, D_HID), lambda i: (0, 0)),     # w1 (bf16, resident)
                pl.BlockSpec((1, D_HID), lambda i: (0, 0)),        # b1
                pl.BlockSpec((D_HID, EB), lambda i: (0, 0)),       # w2*scale (bf16, resident)
                pl.BlockSpec((1, EB), lambda i: (0, 0)),           # bn shift
                pl.BlockSpec((tm_eff, 1), lambda i: (i, 0)),       # mask rows
            ],
            out_specs=pl.BlockSpec((tm_eff, EB), lambda i: (i, 0)),
        ),
        compiler_params=pltpu.CompilerParams(
            dimension_semantics=("parallel",),
            vmem_limit_bytes=48 * 1024 * 1024,
        ),
    )(x2, w1_bf, b1_2, w2_bf, shift, m2)

    return out.reshape(B, L, I, EB)


def gettext_reference(x, outfit_mask, params):
    """Plain JAX (f32) reference matching the PyTorch eval-mode forward."""
    w1, b1, w2, gamma, beta, run_mean, run_var = params
    B, L, I, _ = x.shape
    h = jnp.maximum(x.reshape(-1, D_IN) @ w1 + b1, 0.0)
    y = h @ w2
    y = (y - run_mean) * jax.lax.rsqrt(run_var + 1e-5) * gamma + beta
    y = y.reshape(B, L, I, EB)
    return y * outfit_mask[..., None]


def init_params(key):
    k1, k2, k3, k4, k5, k6 = jax.random.split(key, 6)
    # Linear(300, 512): weight (300, 512) stored pre-transposed, bias (512,)
    w1 = jax.random.uniform(k1, (D_IN, D_HID), jnp.float32, -0.05, 0.05)
    b1 = jax.random.uniform(k2, (D_HID,), jnp.float32, -0.05, 0.05)
    # Linear(512, EB, bias=False): weight (512, EB)
    w2 = jax.random.uniform(k3, (D_HID, EB), jnp.float32, -0.05, 0.05)
    # BatchNorm1d(EB) parameters + running stats (deterministic, nontrivial)
    gamma = 1.0 + 0.1 * jax.random.normal(k4, (EB,), jnp.float32)
    beta = 0.1 * jax.random.normal(k5, (EB,), jnp.float32)
    run_mean = 0.05 * jax.random.normal(k6, (EB,), jnp.float32)
    run_var = jnp.ones((EB,), jnp.float32)
    return (w1, b1, w2, gamma, beta, run_mean, run_var)


if __name__ == "__main__":
    key = jax.random.PRNGKey(0)
    kx, km, kp = jax.random.split(key, 3)

    # N = 3*3*20 = 180 rows.  tm=64 -> 3-step grid with a ragged last tile
    # (52/64 valid rows); the default tm exercises the auto-clamped dual-step
    # path (tm_eff = 96, 2 programs, 84/96 valid in the last tile).
    B, L = 3, 3
    x = jax.random.normal(kx, (B, L, ITEMS, D_IN), jnp.float32)
    outfit_mask = (jax.random.uniform(km, (B, L, ITEMS)) > 0.3).astype(jnp.float32)
    params = init_params(kp)

    ref = gettext_reference(x, outfit_mask, params)

    out_small = jax.block_until_ready(gettext_forward(x, outfit_mask, params, tm=64))
    out_default = jax.block_until_ready(gettext_forward(x, outfit_mask, params))

    assert out_small.shape == (B, L, ITEMS, EB)
    # bf16 MXU operands with f32 accumulation => relaxed f32 tolerance.
    assert jnp.allclose(out_small, ref, atol=3e-2, rtol=3e-2)
    assert jnp.allclose(out_default, ref, atol=3e-2, rtol=3e-2)

    print("KERNEL_OK")
</pallas_src>

<mosaic_0001>
module attributes {stable_mosaic.version = 11 : i64} {
  func.func @gettext_kernel(%arg0: i32, %arg1: memref<64x300xf32, #tpu.memory_space<vmem>>, %arg2: memref<300x512xbf16, #tpu.memory_space<vmem>>, %arg3: memref<1x512xf32, #tpu.memory_space<vmem>>, %arg4: memref<512x128xbf16, #tpu.memory_space<vmem>>, %arg5: memref<1x128xf32, #tpu.memory_space<vmem>>, %arg6: memref<64x1xf32, #tpu.memory_space<vmem>>, %arg7: memref<64x128xf32, #tpu.memory_space<vmem>>) attributes {dimension_semantics = [#tpu.dimension_semantics<parallel>], iteration_bounds = array<i64: 3>, scalar_prefetch = 0 : i64, scratch_operands = 0 : i64, tpu.core_type = #tpu.core_type<tc>, window_params = [{transform_indices = @transform_0, window_bounds = array<i64: 64, 300>}, {pipeline_mode = #tpu.pipeline_mode<synchronous>, transform_indices = @transform_1, window_bounds = array<i64: 300, 512>}, {pipeline_mode = #tpu.pipeline_mode<synchronous>, transform_indices = @transform_2, window_bounds = array<i64: 1, 512>}, {pipeline_mode = #tpu.pipeline_mode<synchronous>, transform_indices = @transform_3, window_bounds = array<i64: 512, 128>}, {pipeline_mode = #tpu.pipeline_mode<synchronous>, transform_indices = @transform_4, window_bounds = array<i64: 1, 128>}, {transform_indices = @transform_5, window_bounds = array<i64: 64, 1>}, {transform_indices = @transform_6, window_bounds = array<i64: 64, 128>}]} {
    %c0 = arith.constant 0 : index
    %c0_0 = arith.constant 0 : index
    %0 = vector.load %arg1[%c0, %c0_0] : memref<64x300xf32, #tpu.memory_space<vmem>>, vector<64x300xf32>
    %1 = arith.truncf %0 : vector<64x300xf32> to vector<64x300xbf16>
    %c0_1 = arith.constant 0 : index
    %c0_2 = arith.constant 0 : index
    %2 = vector.load %arg2[%c0_1, %c0_2] : memref<300x512xbf16, #tpu.memory_space<vmem>>, vector<300x512xbf16>
    %cst = arith.constant dense<0.000000e+00> : vector<64x512xf32>
    %3 = tpu.matmul %1, %2, %cst {dimension_numbers = #tpu.dot_dimension_numbers<[1], [0], [0], [1], [0, 0, 1, 1], [], []>} : vector<64x300xbf16>, vector<300x512xbf16>, vector<64x512xf32> -> vector<64x512xf32>
    %c0_3 = arith.constant 0 : index
    %c0_4 = arith.constant 0 : index
    %4 = vector.load %arg3[%c0_3, %c0_4] : memref<1x512xf32, #tpu.memory_space<vmem>>, vector<1x512xf32>
    %5 = vector.broadcast %4 : vector<1x512xf32> to vector<64x512xf32>
    %6 = arith.addf %3, %5 : vector<64x512xf32>
    %cst_5 = arith.constant 0.000000e+00 : f32
    %7 = vector.broadcast %cst_5 : f32 to vector<64x512xf32>
    %8 = arith.maximumf %6, %7 : vector<64x512xf32>
    %9 = arith.truncf %8 : vector<64x512xf32> to vector<64x512xbf16>
    %c0_6 = arith.constant 0 : index
    %c0_7 = arith.constant 0 : index
    %10 = vector.load %arg4[%c0_6, %c0_7] : memref<512x128xbf16, #tpu.memory_space<vmem>>, vector<512x128xbf16>
    %cst_8 = arith.constant dense<0.000000e+00> : vector<64x128xf32>
    %11 = tpu.matmul %9, %10, %cst_8 {dimension_numbers = #tpu.dot_dimension_numbers<[1], [0], [0], [1], [0, 0, 1, 1], [], []>} : vector<64x512xbf16>, vector<512x128xbf16>, vector<64x128xf32> -> vector<64x128xf32>
    %c0_9 = arith.constant 0 : index
    %c0_10 = arith.constant 0 : index
    %12 = vector.load %arg5[%c0_9, %c0_10] : memref<1x128xf32, #tpu.memory_space<vmem>>, vector<1x128xf32>
    %13 = vector.broadcast %12 : vector<1x128xf32> to vector<64x128xf32>
    %14 = arith.addf %11, %13 : vector<64x128xf32>
    %c64_i32 = arith.constant 64 : i32
    %15 = arith.muli %arg0, %c64_i32 : i32
    %16 = tpu.iota {dimensions = array<i32: 0>} : vector<64x1xi32>
    %17 = vector.broadcast %15 : i32 to vector<64x1xi32>
    %18 = arith.addi %17, %16 : vector<64x1xi32>
    %c180_i32 = arith.constant 180 : i32
    %19 = vector.broadcast %c180_i32 : i32 to vector<64x1xi32>
    %20 = arith.cmpi slt, %18, %19 : vector<64x1xi32>
    %c0_11 = arith.constant 0 : index
    %c0_12 = arith.constant 0 : index
    %21 = vector.load %arg6[%c0_11, %c0_12] : memref<64x1xf32, #tpu.memory_space<vmem>>, vector<64x1xf32>
    %cst_13 = arith.constant 0.000000e+00 : f32
    %22 = vector.broadcast %cst_13 : f32 to vector<64x1xf32>
    %23 = arith.select %20, %21, %22 : vector<64x1xi1>, vector<64x1xf32>
    %24 = vector.broadcast %23 : vector<64x1xf32> to vector<64x128xf32>
    %25 = arith.mulf %14, %24 : vector<64x128xf32>
    %c0_14 = arith.constant 0 : index
    %c0_15 = arith.constant 0 : index
    %26 = vector.load %arg7[%c0_14, %c0_15] : memref<64x128xf32, #tpu.memory_space<vmem>>, vector<64x128xf32>
    tpu.vector_store %arg7[%c0_14, %c0_15], %25 {strides = array<i32>} : memref<64x128xf32, #tpu.memory_space<vmem>>, vector<64x128xf32>,
    return
  }
  func.func @transform_0(%arg0: i32) -> (i32, i32) {
    %c0_i32 = arith.constant 0 : i32
    %c0_i32_0 = arith.constant 0 : i32
    return %arg0, %c0_i32 : i32, i32
  }
  func.func @transform_1(%arg0: i32) -> (i32, i32) {
    %c0_i32 = arith.constant 0 : i32
    %c0_i32_0 = arith.constant 0 : i32
    %c0_i32_1 = arith.constant 0 : i32
    return %c0_i32, %c0_i32_0 : i32, i32
  }
  func.func @transform_2(%arg0: i32) -> (i32, i32) {
    %c0_i32 = arith.constant 0 : i32
    %c0_i32_0 = arith.constant 0 : i32
    %c0_i32_1 = arith.constant 0 : i32
    return %c0_i32, %c0_i32_0 : i32, i32
  }
  func.func @transform_3(%arg0: i32) -> (i32, i32) {
    %c0_i32 = arith.constant 0 : i32
    %c0_i32_0 = arith.constant 0 : i32
    %c0_i32_1 = arith.constant 0 : i32
    return %c0_i32, %c0_i32_0 : i32, i32
  }
  func.func @transform_4(%arg0: i32) -> (i32, i32) {
    %c0_i32 = arith.constant 0 : i32
    %c0_i32_0 = arith.constant 0 : i32
    %c0_i32_1 = arith.constant 0 : i32
    return %c0_i32, %c0_i32_0 : i32, i32
  }
  func.func @transform_5(%arg0: i32) -> (i32, i32) {
    %c0_i32 = arith.constant 0 : i32
    %c0_i32_0 = arith.constant 0 : i32
    return %arg0, %c0_i32 : i32, i32
  }
  func.func @transform_6(%arg0: i32) -> (i32, i32) {
    %c0_i32 = arith.constant 0 : i32
    %c0_i32_0 = arith.constant 0 : i32
    return %arg0, %c0_i32 : i32, i32
  }
}

</mosaic_0001>

<bundles_post_ra>
// kernel: gettext_forward.1
= control target key start
LH: loop header
LB: loop body
LE: loop exit
PB: predicated region body
PF: predicated region fallthrough
CT: control target
= control target key end

     0   :  { %s2555_s21 = smov 0   ;;  %s2557_s22 = smov 0   ;;  %s3237_s0 = inlined_call_operand.vmem [shape: f32[180,300], index: 0, kind: input, shape index: {}]   ;;  %s3238_s1 = inlined_call_operand.vmem [shape: bf16[300,512], index: 1, kind: input, shape index: {}]   ;;  %s3239_s2 = inlined_call_operand.vmem [shape: f32[1,512], index: 2, kind: input, shape index: {}]   ;;  %s3240_s3 = inlined_call_operand.vmem [shape: bf16[512,128], index: 3, kind: input, shape index: {}]   ;;  %s3241_s4 = inlined_call_operand.vmem [shape: f32[1,128], index: 4, kind: input, shape index: {}]   ;;  %s3242_s5 = inlined_call_operand.vmem [shape: f32[180,1], index: 5, kind: input, shape index: {}]   ;;  %s3243_s6 = inlined_call_operand.vmem [shape: f32[180,128], index: 6, kind: output, shape index: {}]  }
   0x1   :  { %s2559_s23 = smov 0  }
   0x2 LB: > { %s2568_s24 = sadd.s32 4294967295, %s2485_s23   ;;  %s2570_s25 = sadd.s32 1, %s2485_s23   ;;  %s2485_s23 = sphi %s2559_s23, %s3250_s23   ;;  %s2481_s22 = sphi %s2557_s22, %s3249_s22   ;;  %s2477_s21 = sphi %s2555_s21, %s3248_s21  }
   0x3   : > { %s156_s26 = ssub.s32 %s2485_s23, %s2570_s25  ;;  %s159_s27 = sadd.s32 1, %s2481_s22 }
   0x4   : > { %p157_p0 = scmp.eq.s32.totalorder %s156_s26, 0  ;;  %p169_p1 = scmp.ne.s32.totalorder %s2481_s22, %s2477_s21 }
   0x5   : > { %p170_p2 = scmp.eq.s32.totalorder %s2568_s24, 2  ;;  %p1951_p3 = scmp.ge.s32.totalorder %s2485_s23, 1 }
   0x6   : > { %s2578_s28 = scalar_select %p157_p0, %s2481_s22, %s159_s27  }
   0x7   : > { %p2580_p4 = por %p170_p2, %p169_p1  ;;  %p243_p5 = scmp.lt.s32.totalorder %s2485_s23, 4 }
   0x9   : > { %p244_p6 = pnand %p1951_p3, %p243_p5 }
   0xa   : > { %s2592_s10 = sshll.u32 (!%p244_p6), %s2568_s24, 3  ;;  %s2076_s13 = sshll.u32 (!%p244_p6), %s2568_s24, 6 }
   0xb   : > { %247 = sbr.rel (%p244_p6) target bundleno = 589 (0x24d), region = 44  ;;  %p293_p7 = scmp.lt.s32.totalorder (!%p244_p6), %s2592_s10, 22 }
   0xc   : > { %s284_s19 = sand.u32 (!%p244_p6), 1, %s2477_s21  }
   0xd   : > { %s1952_s20 = sshll.u32 (!%p244_p6), %s284_s19, 6 }
   0xe   : > { %s3159_s21 = scalar_lea.vmem (!%p244_p6), [#allocation2], %s1952_s20  }
  0x10   : > { %v2285_v0 = vld [vmem:[%s3238_s1 + $0xe4] ss:$16 sps:$4 sm:$0xff]   ;;  %v2287_v1 = vld [vmem:[%s3238_s1 + $0xe0] ss:$16 sps:$4 sm:$0xff]   ;;  %v2519_v2 = vmov 0   ;;  %s2607_s17 = scalar_select %p293_p7, %s2592_s10, 22 }
  0x11   : > { %965 = vmatprep.mubr.bf16.mxu1 %v2519_v2  ;;  %2283 = vset.pattern.permute.xlu0 %v2519_v2  ;;  %v2288_v3 = vld [vmem:[%s3238_s1 + $0xc4] ss:$16 sps:$4 sm:$0xff]   ;;  %v2290_v4 = vld [vmem:[%s3238_s1 + $0xc0] ss:$16 sps:$4 sm:$0xff]   ;;  %vm847_vm0 = vcmask 1045504   ;;  %vm834_vm1 = vcmask 359424   ;;  %s3183_s7 = scalar_lea.vmem (%p2580_p4), %s3243_s6, %s2076_s13  }
  0x12   : > { %860 = vmatprep.subr.bf16.mxu0 %v2285_v0  ;;  %2284 = vset.pattern.permute.xlu1 %v2519_v2  ;;  %v2291_v5 = vld [vmem:[%s3238_s1 + $0xa4] ss:$16 sps:$4 sm:$0xff]   ;;  %v2299_v7 = vld [vmem:[%s3238_s1 + $0x240] ss:$16 sps:$4 sm:$0x3f]   ;;  %s2193_s8 = smul.u32 24, %s2607_s17 }
  0x13   : > { %861 = vmatpush1.bf16.msra.mxu0 %v2287_v1  ;;  %v2297_v6 = vld [vmem:[%s3238_s1 + $0x244] ss:$16 sps:$4 sm:$0x3f]   ;;  %v2293_v8 = vld [vmem:[%s3238_s1 + $0xa0] ss:$16 sps:$4 sm:$0xff]   ;;  %v849_v10 = vsel %vm847_vm0, %v2299_v7, 0 }
  0x14   : > { %862 = vmatprep.subr.bf16.mxu0 %v2288_v3  ;;  %v2294_v9 = vld [vmem:[%s3238_s1 + $0x84] ss:$16 sps:$4 sm:$0xff]   ;;  %2033 = vmatprep.subr.msk.bf16.mxu1 %vm847_vm0, %v2297_v6  ;;  %v2305_v12 = vld [vmem:[%s3238_s1 + $0x220] ss:$16 sps:$4 sm:$0xff]   ;;  %s2642_s27 = scalar_lea.vmem %s3237_s0, %s2193_s8  ;;  %v2317_v18 = vld [vmem:[%s3238_s1 + $0xec] ss:$16 sps:$4 sm:$0xff]  }
  0x15   : > { %944 = vmatpush1.bf16.msra.mxu1 %v849_v10  ;;  %v2303_v11 = vld [vmem:[%s3238_s1 + $0x224] ss:$16 sps:$4 sm:$0xff]   ;;  %v2296_v13 = vld [vmem:[%s3238_s1 + $0x80] ss:$16 sps:$4 sm:$0xff]   ;;  %v329_v20 = vld [vmem:[%s2642_s27 + $0x28] sm:$0xff]  ;;  %s1956_s12 = sshll.u32 %s2607_s17, 3 }
  0x16   : > { %945 = vmatprep.subr.bf16.mxu1 %v2303_v11  ;;  %v2309_v14 = vld [vmem:[%s3238_s1 + $0x204] ss:$16 sps:$4 sm:$0xff]   ;;  %v2311_v16 = vld [vmem:[%s3238_s1 + $0x200] ss:$16 sps:$4 sm:$0xff]   ;;  %v2315_v23 = vld [vmem:[%s3238_s1 + $0xe8] ss:$16 sps:$4 sm:$0xff]   ;;  %s3043_s15 = scalar_lea.vmem %s3242_s5, %s1956_s12 }
  0x17   : > { %863 = vmatpush1.bf16.msra.mxu0 %v2290_v4  ;;  %v2300_v15 = vld [vmem:[%s3238_s1 + $0x64] ss:$16 sps:$4 sm:$0xff]   ;;  %v2302_v17 = vld [vmem:[%s3238_s1 + $0x60] ss:$16 sps:$4 sm:$0xff]   ;;  %v2323_v24 = vld [vmem:[%s3238_s1 + $0xcc] ss:$16 sps:$4 sm:$0xff]  }
  0x18   : > { %864 = vmatprep.subr.bf16.mxu0 %v2291_v5  ;;  %v326_v19 = vld [vmem:[%s2642_s27 + $0x10] sm:$0xff]  ;;  %v2321_v27 = vld [vmem:[%s3238_s1 + $0xc8] ss:$16 sps:$4 sm:$0xff]   ;;  %v2329_v28 = vld [vmem:[%s3238_s1 + $0xac] ss:$16 sps:$4 sm:$0xff]   ;;  %s1700_s23 = ssub.s32 (%p2580_p4), 23, %s2592_s10 }
  0x19   : > { %946 = vmatpush1.bf16.msra.mxu1 %v2305_v12  ;;  %v2306_v21 = vld [vmem:[%s3238_s1 + $0x44] ss:$16 sps:$4 sm:$0xff]   ;;  %v2658_v22 = vpack.c.bf16 %v329_v20, %v326_v19  ;;  %v2308_v25 = vld [vmem:[%s3238_s1 + $0x40] ss:$16 sps:$4 sm:$0xff]   ;;  %v2327_v31 = vld [vmem:[%s3238_s1 + $0xa8] ss:$16 sps:$4 sm:$0xff]  }
  0x1a   : > { %947 = vmatprep.subr.bf16.mxu1 %v2309_v14  ;;  %v2312_v26 = vld [vmem:[%s3238_s1 + $0x24] ss:$16 sps:$4 sm:$0xff]   ;;  %v2314_v29 = vld [vmem:[%s3238_s1 + $0x20] ss:$16 sps:$4 sm:$0xff]   ;;  %v2335_v32 = vld [vmem:[%s3238_s1 + $0x8c] ss:$16 sps:$4 sm:$0xff]  }
  0x1b   : > { %865 = vmatpush1.bf16.msra.mxu0 %v2293_v8  ;;  %v2318_v30 = vld [vmem:[%s3238_s1 + $0x4] ss:$16 sps:$4 sm:$0xff]   ;;  %v2320_v33 = vld [vmem:[%s3238_s1] ss:$16 sps:$4 sm:$0xff]   ;;  %v2333_v35 = vld [vmem:[%s3238_s1 + $0x88] ss:$16 sps:$4 sm:$0xff]  }
  0x1c   : > { %866 = vmatprep.subr.bf16.mxu0 %v2294_v9  ;;  %v2324_v34 = vld [vmem:[%s3238_s1 + $0x1e4] ss:$16 sps:$4 sm:$0xff]   ;;  %v2341_v36 = vld [vmem:[%s3238_s1 + $0x6c] ss:$16 sps:$4 sm:$0xff]   ;;  %v2326_v37 = vld [vmem:[%s3238_s1 + $0x1e0] ss:$16 sps:$4 sm:$0xff]  }
  0x1d   : > { %948 = vmatpush1.bf16.msra.mxu1 %v2311_v16  ;;  %v2330_v38 = vld [vmem:[%s3238_s1 + $0x1c4] ss:$16 sps:$4 sm:$0xff]   ;;  %v2339_v39 = vld [vmem:[%s3238_s1 + $0x68] ss:$16 sps:$4 sm:$0xff]   ;;  %v2347_v40 = vld [vmem:[%s3238_s1 + $0x4c] ss:$16 sps:$4 sm:$0xff]  }
  0x1e   : > { %1006 = vmatprep.subr.bf16.mxu1 %v2317_v18  ;;  %v2332_v41 = vld [vmem:[%s3238_s1 + $0x1c0] ss:$16 sps:$4 sm:$0xff]   ;;  %v2336_v42 = vld [vmem:[%s3238_s1 + $0x1a4] ss:$16 sps:$4 sm:$0xff]   ;;  %v2345_v43 = vld [vmem:[%s3238_s1 + $0x48] ss:$16 sps:$4 sm:$0xff]  }
  0x1f   : > { %867 = vmatpush1.bf16.msra.mxu0 %v2296_v13  ;;  %v2353_v44 = vld [vmem:[%s3238_s1 + $0x2c] ss:$16 sps:$4 sm:$0xff]   ;;  %v2338_v45 = vld [vmem:[%s3238_s1 + $0x1a0] ss:$16 sps:$4 sm:$0xff]   ;;  %v2342_v47 = vld [vmem:[%s3238_s1 + $0x184] ss:$16 sps:$4 sm:$0xff]  }
  0x20   : > { %868 = vmatprep.subr.bf16.mxu0 %v2300_v15  ;;  %2034 = vmatmul.mubr.msk.bf16.vlgmr.msra.gmra.mxu1 %vm834_vm1, %v2658_v22  ;;  %v325_v46 = vld [vmem:[%s2642_s27 + $0x8] sm:$0xff]  ;;  %v328_v49 = vld [vmem:[%s2642_s27 + $0x20] sm:$0xff]  ;;  %v335_v53 = vld [vmem:[%s2642_s27 + $0x58] sm:$0xff]  ;;  %p1701_p8 = scmp.lt.s32.totalorder (%p2580_p4), %s1700_s23, 8 }
  0x21   : > { %1007 = vmatpush1.bf16.msra.mxu1 %v2315_v23  ;;  %975 = vmatprep.mubr.bf16.mxu1 %v2519_v2  ;;  %v2351_v48 = vld [vmem:[%s3238_s1 + $0x28] ss:$16 sps:$4 sm:$0xff]   ;;  %v2359_v50 = vld [vmem:[%s3238_s1 + $0xc] ss:$16 sps:$4 sm:$0xff]   ;;  %v2743_v51 = vpack.c.bf16 %v328_v49, %v325_v46  ;;  %v332_v52 = vld [vmem:[%s2642_s27 + $0x40] sm:$0xff] }
  0x22   : > { %1008 = vmatprep.subr.bf16.mxu1 %v2323_v24  ;;  %v2344_v54 = vld [vmem:[%s3238_s1 + $0x180] ss:$16 sps:$4 sm:$0xff]   ;;  %v2751_v55 = vpack.c.bf16 %v335_v53, %v332_v52  ;;  %v2348_v56 = vld [vmem:[%s3238_s1 + $0x164] ss:$16 sps:$4 sm:$0xff]   ;;  %v2357_v57 = vld [vmem:[%s3238_s1 + $0x8] ss:$16 sps:$4 sm:$0xff]  }
  0x23   : > { %869 = vmatpush1.bf16.msra.mxu0 %v2302_v17  ;;  %892 = vmatprep.mubr.bf16.mxu0 %v2743_v51  ;;  %v2350_v58 = vld [vmem:[%s3238_s1 + $0x160] ss:$16 sps:$4 sm:$0xff]   ;;  %v2365_v59 = vld [vmem:[%s3238_s1 + $0x1ec] ss:$16 sps:$4 sm:$0xff]   ;;  %v2354_v62 = vld [vmem:[%s3238_s1 + $0x144] ss:$16 sps:$4 sm:$0xff]  }
  0x24   : > { %870 = vmatprep.subr.bf16.mxu0 %v2306_v21  ;;  %v338_v60 = vld [vmem:[%s2642_s27 + $0x70] sm:$0xff]  ;;  %v341_v61 = vld [vmem:[%s2642_s27 + $0x88] sm:$0xff]  ;;  %v344_v9 = vld [vmem:[%s2642_s27 + $0xa0] sm:$0xff] }
  0x25   : > { %1009 = vmatpush1.bf16.msra.mxu1 %v2321_v27  ;;  %v2363_v63 = vld [vmem:[%s3238_s1 + $0x1e8] ss:$16 sps:$4 sm:$0xff]   ;;  %v2371_v0 = vld [vmem:[%s3238_s1 + $0x1cc] ss:$16 sps:$4 sm:$0xff]   ;;  %v2779_v1 = vpack.c.bf16 %v341_v61, %v338_v60  ;;  %v2356_v3 = vld [vmem:[%s3238_s1 + $0x140] ss:$16 sps:$4 sm:$0xff]  }
  0x26   : > { %1010 = vmatprep.subr.bf16.mxu1 %v2329_v28  ;;  %v2360_v4 = vld [vmem:[%s3238_s1 + $0x124] ss:$16 sps:$4 sm:$0xff]   ;;  %v2362_v5 = vld [vmem:[%s3238_s1 + $0x120] ss:$16 sps:$4 sm:$0xff]   ;;  %v2369_v6 = vld [vmem:[%s3238_s1 + $0x1c8] ss:$16 sps:$4 sm:$0xff]  }
  0x27   : > { %871 = vmatpush1.bf16.msra.mxu0 %v2308_v25  ;;  %v2376_v7 = vld [vmem:[%s3238_s1 + $0x1ac] ss:$16 sps:$4 sm:$0xff]   ;;  %v2377_v8 = vld [vmem:[%s3238_s1 + $0x248] ss:$16 sps:$4 sm:$0x3f]   ;;  %v324_v13 = vld [vmem:[%s2642_s27] sm:$0xff] }
  0x28   : > { %872 = vmatprep.subr.bf16.mxu0 %v2312_v26  ;;  %2035 = vmatmul.mubr.msk.bf16.gmra.mxu1 %vm834_vm1, %v2751_v55  ;;  %v347_v10 = vld [vmem:[%s2642_s27 + $0xb8] sm:$0xff]  ;;  %v2366_v11 = vld [vmem:[%s3238_s1 + $0x104] ss:$16 sps:$4 sm:$0xff]   ;;  %v2368_v12 = vld [vmem:[%s3238_s1 + $0x100] ss:$16 sps:$4 sm:$0xff]   ;;  %v855_v17 = vsel %vm847_vm0, %v2377_v8, 0 }
  0x29   : > { %1011 = vmatpush1.bf16.msra.mxu1 %v2327_v31  ;;  %985 = vmatprep.mubr.bf16.mxu1 %v2519_v2  ;;  %v327_v14 = vld [vmem:[%s2642_s27 + $0x18] sm:$0xff]  ;;  %v334_v20 = vld [vmem:[%s2642_s27 + $0x50] sm:$0xff]  ;;  %v2824_v21 = vpack.c.bf16 %v347_v10, %v344_v9  ;;  %v333_v31 = vld [vmem:[%s2642_s27 + $0x48] sm:$0xff] }
  0x2a   : > { %1012 = vmatprep.subr.bf16.mxu1 %v2335_v32  ;;  %v2374_v15 = vld [vmem:[%s3238_s1 + $0x1a8] ss:$16 sps:$4 sm:$0xff]   ;;  %v2372_v16 = vld [vmem:[%s3238_s1 + $0x24c] ss:$16 sps:$4 sm:$0x3f]   ;;  %v348_v25 = vpack.c.bf16 %v327_v14, %v324_v13  ;;  %v346_v46 = vld [vmem:[%s2642_s27 + $0xb0] sm:$0xff] }
  0x2b   : > { %873 = vmatpush1.bf16.msra.mxu0 %v2314_v29  ;;  %v2380_v18 = vld [vmem:[%s3238_s1 + $0x18c] ss:$16 sps:$4 sm:$0xff]   ;;  %v2378_v23 = vld [vmem:[%s3238_s1 + $0x188] ss:$16 sps:$4 sm:$0xff]   ;;  %v2405_v60 = vld [vmem:[%s3240_s3 + $0x60] sm:$0xff]  }
  0x2c   : > { %874 = vmatprep.subr.bf16.mxu0 %v2318_v30  ;;  %v331_v19 = vld [vmem:[%s2642_s27 + $0x38] sm:$0xff]  ;;  %v330_v30 = vld [vmem:[%s2642_s27 + $0x30] sm:$0xff]  ;;  %v2406_v61 = vld [vmem:[%s3240_s3 + $0x20] sm:$0xff]  }
  0x2d   : > { %1013 = vmatpush1.bf16.msra.mxu1 %v2333_v35  ;;  %v2383_v24 = vld [vmem:[%s3238_s1 + $0x16c] ss:$16 sps:$4 sm:$0xff]   ;;  %v352_v27 = vpack.c.bf16 %v334_v20, %v331_v19  ;;  %v2381_v28 = vld [vmem:[%s3238_s1 + $0x168] ss:$16 sps:$4 sm:$0xff]   ;;  %v2975_v10 = vld [vmem:[%s3240_s3 + $0xe0] sm:$0xff]   ;;  %v438_v20 = vlaneseq }
  0x2e   : > { %1014 = vmatprep.subr.bf16.mxu1 %v2341_v36  ;;  %v2386_v26 = vld [vmem:[%s3238_s1 + $0x22c] ss:$16 sps:$4 sm:$0xff]   ;;  %v2384_v32 = vld [vmem:[%s3238_s1 + $0x228] ss:$16 sps:$4 sm:$0xff]   ;;  %v2999_v14 = vld [vmem:[%s3240_s3 + $0xd0] sm:$0xff]  }
  0x2f   : > { %875 = vmatpush1.bf16.msra.mxu0 %v2320_v33  ;;  %v2389_v29 = vld [vmem:[%s3238_s1 + $0x14c] ss:$16 sps:$4 sm:$0xff]   ;;  %v2387_v36 = vld [vmem:[%s3238_s1 + $0x148] ss:$16 sps:$4 sm:$0xff]   ;;  %v3028_v19 = vld [vmem:[%s3240_s3 + $0x80] sm:$0xff]  }
  0x30   : > { %876 = vmatprep.subr.bf16.mxu0 %v2324_v34  ;;  %2036 = vmatmul.mubr.msk.bf16.gmra.mxu1 %vm834_vm1, %v2779_v1  ;;  %v337_v33 = vld [vmem:[%s2642_s27 + $0x68] sm:$0xff]  ;;  %v340_v34 = vld [vmem:[%s2642_s27 + $0x80] sm:$0xff]  ;;  %v2399_v53 = vld [vmem:[%s3240_s3 + $0x78] sm:$0xff]  }
  0x31   : > { %1015 = vmatpush1.bf16.msra.mxu1 %v2339_v39  ;;  %995 = vmatprep.mubr.bf16.mxu1 %v2519_v2  ;;  %v2398_v35 = vld [vmem:[%s3238_s1 + $0x20c] ss:$16 sps:$4 sm:$0xff]   ;;  %v351_v39 = vpack.c.bf16 %v333_v31, %v330_v30  ;;  %v1620_v30 = vld [vmem:[%s3043_s15] sm:$0xff] }
  0x32   : > { %1016 = vmatprep.subr.bf16.mxu1 %v2347_v40  ;;  %v355_v40 = vpack.c.bf16 %v340_v34, %v337_v33  ;;  %v2963_v8 = vld [vmem:[%s3240_s3 + $0xe8] sm:$0xff]   ;;  %v2992_v13 = vld [vmem:[%s3240_s3 + $0x98] sm:$0xff]   ;;  %v1622_v33 = vld [vmem:[%s3043_s15 + $0x10] sm:$0xff] }
  0x33   : > { %877 = vmatpush2.bf16.msra.mxu0 %v2326_v37  ;;  %v2392_v37 = vld [vmem:[%s3238_s1 + $0x12c] ss:$16 sps:$4 sm:$0xff]  }
  0x34   : > { %878 = vmatprep.subr.bf16.mxu0 %v2330_v38  ;;  %v2396_v38 = vld [vmem:[%s3238_s1 + $0x208] ss:$16 sps:$4 sm:$0xff]  }
  0x35   : > { %1017 = vmatpush1.bf16.msra.mxu1 %v2345_v43  ;;  %v336_v43 = vld [vmem:[%s2642_s27 + $0x60] sm:$0xff]  ;;  %v2968_v9 = vld [vmem:[%s3240_s3 + $0xa8] sm:$0xff]  }
  0x36   : > { %1018 = vmatprep.subr.bf16.mxu1 %v2353_v44  ;;  %v339_v44 = vld [vmem:[%s2642_s27 + $0x78] sm:$0xff] }
  0x37   : > { %879 = vmatpush2.bf16.msra.mxu0 %v2332_v41  ;;  %v2390_v41 = vld [vmem:[%s3238_s1 + $0x128] ss:$16 sps:$4 sm:$0xff]  }
  0x38   : > { %880 = vmatprep.subr.bf16.mxu0 %v2336_v42  ;;  %2037 = vmatmul.mubr.msk.bf16.gmra.mxu1 %vm834_vm1, %v2824_v21  ;;  %v2395_v42 = vld [vmem:[%s3238_s1 + $0x10c] ss:$16 sps:$4 sm:$0xff]  }
  0x39   : > { %1019 = vmatpush1.bf16.msra.mxu1 %v2351_v48  ;;  %1038 = vmatprep.mubr.bf16.mxu1 %v2743_v51  ;;  %v354_v48 = vpack.c.bf16 %v339_v44, %v336_v43  ;;  %v345_v51 = vld [vmem:[%s2642_s27 + $0xa8] sm:$0xff] }
  0x3a   : > { %1020 = vmatprep.subr.bf16.mxu1 %v2359_v50  ;;  %v342_v50 = vld [vmem:[%s2642_s27 + $0x90] sm:$0xff] }
  0x3b   : > { %881 = vmatpush2.bf16.msra.mxu0 %v2338_v45  ;;  %v343_v45 = vld [vmem:[%s2642_s27 + $0x98] sm:$0xff]  ;;  %v357_v52 = vpack.c.bf16 %v345_v51, %v342_v50 }
  0x3c   : > { %882 = vmatprep.subr.bf16.mxu0 %v2342_v47  ;;  %v2393_v47 = vld [vmem:[%s3238_s1 + $0x108] ss:$16 sps:$4 sm:$0xff]   ;;  %v358_v49 = vpack.c.bf16 %v346_v46, %v343_v45  ;;  %v1624_v46 = vld [vmem:[%s3043_s15 + $0x20] sm:$0xff] }
  0x3d   : > { %1021 = vmatpush1.bf16.msra.mxu1 %v2357_v57  ;;  %v2402_v57 = vld [vmem:[%s3240_s3 + $0x30] sm:$0xff]   ;;  %v1625_v45 = vld [vmem:[%s3043_s15 + $0x28] sm:$0xff]  ;;  %v1627_v51 = vld [vmem:[%s3043_s15 + $0x38] sm:$0xff] }
  0x3e   : > { %1022 = vmatprep.subr.bf16.mxu1 %v2365_v59  ;;  %v2404_v59 = vld [vmem:[%s3240_s3 + $0x28] sm:$0xff]  }
  0x3f   : > { %883 = vmatpush2.bf16.msra.mxu0 %v2344_v54  ;;  %v2400_v54 = vld [vmem:[%s3240_s3 + $0x38] sm:$0xff]  }
  0x40   : > { %884 = vmatprep.subr.bf16.mxu0 %v2348_v56  ;;  %v2401_v56 = vld [vmem:[%s3240_s3 + $0x70] sm:$0xff]  }
  0x41   : > { %1023 = vmatpush2.bf16.msra.mxu1 %v2363_v63  ;;  %v2411_v63 = vld [vmem:[%s3240_s3 + $0x48] sm:$0xff]  }
  0x42   : > { %1024 = vmatprep.subr.bf16.mxu1 %v2371_v0  ;;  %v2412_v0 = vld [vmem:[%s3240_s3 + $0x8] sm:$0xff]  }
  0x43   : > { %885 = vmatpush2.bf16.msra.mxu0 %v2350_v58  ;;  %v2403_v58 = vld [vmem:[%s3240_s3 + $0x68] sm:$0xff]  }
  0x44   : > { %886 = vmatprep.subr.bf16.mxu0 %v2354_v62  ;;  %v2408_v62 = vld [vmem:[%s3240_s3 + $0x18] sm:$0xff]  }
  0x45   : > { %1025 = vmatpush2.bf16.msra.mxu1 %v2369_v6  ;;  %v2951_v6 = vld [vmem:[%s3240_s3 + $0xf0] sm:$0xff]  }
  0x46   : > { %1026 = vmatprep.subr.bf16.mxu1 %v2376_v7  ;;  %v2956_v7 = vld [vmem:[%s3240_s3 + $0xb0] sm:$0xff]  }
  0x47   : > { %887 = vmatpush2.bf16.msra.mxu0 %v2356_v3  ;;  %v2414_v3 = vld [vmem:[%s3240_s3] sm:$0xff]  }
  0x48   : > { %888 = vmatprep.subr.bf16.mxu0 %v2360_v4  ;;  %v2415_v4 = vld [vmem:[%s3240_s3 + $0xf8] sm:$0xff]  }
  0x49   : > { %1027 = vmatpush2.bf16.msra.mxu1 %v2374_v15  ;;  %v3004_v15 = vld [vmem:[%s3240_s3 + $0x90] sm:$0xff]  }
  0x4a   : > { %1028 = vmatprep.subr.bf16.mxu1 %v2380_v18  ;;  %v3023_v18 = vld [vmem:[%s3240_s3 + $0xc0] sm:$0xff]  }
  0x4b   : > { %889 = vmatpush2.bf16.msra.mxu0 %v2362_v5  ;;  %v2945_v5 = vld [vmem:[%s3240_s3 + $0xb8] sm:$0xff]  }
  0x4c   : > { %890 = vmatprep.subr.bf16.mxu0 %v2366_v11  ;;  %v2980_v11 = vld [vmem:[%s3240_s3 + $0xa0] sm:$0xff]  }
  0x4d   : > { %1029 = vmatpush2.bf16.msra.mxu1 %v2378_v23 }
  0x4e   : > { %1030 = vmatprep.subr.bf16.mxu1 %v2383_v24 }
  0x4f   : > { %891 = vmatpush2.bf16.msra.mxu0 %v2368_v12  ;;  %v2987_v12 = vld [vmem:[%s3240_s3 + $0xd8] sm:$0xff]  }
  0x50   : > { %2038 = vmatprep.subr.msk.bf16.mxu0 %vm847_vm0, %v2372_v16  ;;  %v3011_v16 = vld [vmem:[%s3240_s3 + $0xc8] sm:$0xff]  }
  0x51   : > { %1031 = vmatpush2.bf16.msra.mxu1 %v2381_v28 }
  0x52   : > { %893 = vmatmul.mubr.bf16.vlgmr.msra.gmra.mxu0 %v348_v25  ;;  %1032 = vmatprep.subr.bf16.mxu1 %v2389_v29 }
  0x53   : > { %1090 = vmatpush1.bf16.msra.mxu0 %v855_v17  ;;  %902 = vmatprep.mubr.bf16.mxu0 %v352_v27  ;;  %v3016_v17 = vld [vmem:[%s3240_s3 + $0x88] sm:$0xff]  }
  0x54   : > { %1091 = vmatprep.subr.bf16.mxu0 %v2386_v26 }
  0x55   : > { %1033 = vmatpush2.bf16.msra.mxu1 %v2387_v36 }
  0x56   : > { %1034 = vmatprep.subr.bf16.mxu1 %v2392_v37 }
  0x57   : > { %1092 = vmatpush1.bf16.msra.mxu0 %v2384_v32 }
  0x58   : > { %1093 = vmatprep.subr.bf16.mxu0 %v2398_v35 }
  0x59   : > { %1035 = vmatpush2.bf16.msra.mxu1 %v2390_v41 }
  0x5a   : > { %903 = vmatmul.mubr.bf16.gmra.mxu0 %v351_v39  ;;  %1036 = vmatprep.subr.bf16.mxu1 %v2395_v42 }
  0x5b   : > { %912 = vmatprep.mubr.bf16.mxu0 %v355_v40  ;;  %1094 = vmatpush1.bf16.msra.mxu0 %v2396_v38 }
  0x5c   : > { %2137 = vmatprep.subr.bf16.mxu0 %v2415_v4 }
  0x5d   : > { %1037 = vmatpush2.bf16.msra.mxu1 %v2393_v47 }
  0x5e   : > { %2097 = vmatprep.subr.bf16.mxu1 %v2399_v53 }
  0x60   : > { %1039 = vmatmul.mubr.bf16.vlgmr.msra.gmra.mxu1 %v348_v25 }
  0x61   : > { %1048 = vmatprep.mubr.bf16.mxu1 %v352_v27  ;;  %2098 = vmatpush3.bf16.msra.mxu1 %v2400_v54  ;;  %v1603_v27 = vstv %s2076_s13 }
  0x62   : > { %913 = vmatmul.mubr.bf16.gmra.mxu0 %v354_v48  ;;  %2099 = vmatprep.subr.bf16.mxu1 %v2401_v56 }
  0x63   : > { %922 = vmatprep.mubr.bf16.mxu0 %v358_v49 }
  0x65   : > { %2100 = vmatpush3.bf16.msra.mxu1 %v2402_v57 }
  0x66   : > { %2101 = vmatprep.subr.bf16.mxu1 %v2403_v58 }
  0x68   : > { %1049 = vmatmul.mubr.bf16.gmra.mxu1 %v351_v39  ;;  %v1621_v39 = vld [vmem:[%s3043_s15 + $0x8] sm:$0xff] }
  0x69   : > { %1058 = vmatprep.mubr.bf16.mxu1 %v355_v40  ;;  %2102 = vmatpush3.bf16.msra.mxu1 %v2404_v59  ;;  %v1623_v40 = vld [vmem:[%s3043_s15 + $0x18] sm:$0xff] }
  0x6a   : > { %923 = vmatmul.mubr.bf16.gmra.mxu0 %v357_v52  ;;  %2103 = vmatprep.subr.bf16.mxu1 %v2405_v60 }
  0x6b   : > { %1111 = vmatprep.mubr.bf16.mxu0 %v2519_v2 }
  0x6d   : > { %2104 = vmatpush3.bf16.msra.mxu1 %v2406_v61 }
  0x70   : > { %1059 = vmatmul.mubr.bf16.gmra.mxu1 %v354_v48 }
  0x71   : > { %1068 = vmatprep.mubr.bf16.mxu1 %v358_v49 }
  0x72   : > { %2039 = vmatmul.mubr.msk.bf16.vlgmr.msra.gmra.mxu0 %vm834_vm1, %v2658_v22  ;;  %v2407_v22 = vld [vmem:[%s3240_s3 + $0x58] sm:$0xff]  }
  0x73   : > { %1121 = vmatprep.mubr.bf16.mxu0 %v2519_v2  ;;  %2105 = vmatprep.subr.bf16.mxu1 %v2407_v22 }
  0x74   : > { %2106 = vmatpush3.bf16.msra.mxu1 %v2408_v62  ;;  %2138 = vmatpush3.bf16.msra.mxu0 %v2945_v5 }
  0x75   : > { %2139 = vmatprep.subr.bf16.mxu0 %v2951_v6 }
  0x78   : > { %1069 = vmatmul.mubr.bf16.gmra.mxu1 %v357_v52  ;;  %2140 = vmatpush3.bf16.msra.mxu0 %v2956_v7  ;;  %v1626_v52 = vld [vmem:[%s3043_s15 + $0x30] sm:$0xff] }
  0x79   : > { %2141 = vmatprep.subr.bf16.mxu0 %v2963_v8 }
  0x7a   : > { %2040 = vmatmul.mubr.msk.bf16.gmra.mxu0 %vm834_vm1, %v2751_v55  ;;  %v2409_v55 = vld [vmem:[%s3240_s3 + $0x50] sm:$0xff]  }
  0x7b   : > { %1131 = vmatprep.mubr.bf16.mxu0 %v2519_v2  ;;  %2107 = vmatprep.subr.bf16.mxu1 %v2409_v55 }
  0x7c   : > { %2142 = vmatpush3.bf16.msra.mxu0 %v2968_v9 }
  0x7d   : > { %2143 = vmatprep.subr.bf16.mxu0 %v2975_v10 }
  0x80   : > { %2144 = vmatpush3.bf16.msra.mxu0 %v2980_v11 }
  0x81   : > { %2145 = vmatprep.subr.bf16.mxu0 %v2987_v12 }
  0x82   : > { %2041 = vmatmul.mubr.msk.bf16.gmra.mxu0 %vm834_vm1, %v2779_v1  ;;  %v2413_v1 = vld [vmem:[%s3240_s3 + $0x40] sm:$0xff]  }
  0x83   : > { %1141 = vmatprep.mubr.bf16.mxu0 %v2519_v2  ;;  %v2410_v2 = vld [vmem:[%s3240_s3 + $0x10] sm:$0xff]  }
  0x84   : > { %2108 = vmatpush3.bf16.msra.mxu1 %v2410_v2  ;;  %2146 = vmatpush3.bf16.msra.mxu0 %v2992_v13 }
  0x85   : > { %2109 = vmatprep.subr.bf16.mxu1 %v2411_v63  ;;  %2147 = vmatprep.subr.bf16.mxu0 %v2999_v14 }
  0x88   : > { %2110 = vmatpush3.bf16.msra.mxu1 %v2412_v0  ;;  %2148 = vmatpush3.bf16.msra.mxu0 %v3004_v15 }
  0x89   : > { %2111 = vmatprep.subr.bf16.mxu1 %v2413_v1  ;;  %2149 = vmatprep.subr.bf16.mxu0 %v3011_v16 }
  0x8a   : > { %2042 = vmatmul.mubr.msk.bf16.gmra.mxu0 %vm834_vm1, %v2824_v21  ;;  %v3032_v21 = vshrl.u32 %v438_v20, 7 }
  0x8c   : > { %2112 = vmatpush3.bf16.msra.mxu1 %v2414_v3  ;;  %2150 = vmatpush3.bf16.msra.mxu0 %v3016_v17  ;;  %v1596_v23 = vadd.s32 8, %v3032_v21  ;;  %v1597_v24 = vadd.s32 16, %v3032_v21  ;;  %v1598_v25 = vadd.s32 24, %v3032_v21  ;;  %v1600_v26 = vadd.s32 40, %v3032_v21  ;;  %v3070_v3 = vld [vmem:[%s3239_s2] sm:$0xf] }
  0x8d   : > { %2177 = vmatprep.subr.bf16.mxu1 %v2415_v4  ;;  %2151 = vmatprep.subr.bf16.mxu0 %v3023_v18  ;;  %v1599_v28 = vadd.s32 32, %v3032_v21  ;;  %v1604_v29 = vadd.s32 %v1603_v27, %v3032_v21  ;;  %v1602_v37 = vadd.s32 56, %v3032_v21  ;;  %v1601_v38 = vadd.s32 48, %v3032_v21 }
  0x8e   : > { %v1605_v31 = vadd.s32 %v1603_v27, %v1596_v23  ;;  %v1606_v32 = vadd.s32 %v1603_v27, %v1597_v24  ;;  %v1607_v34 = vadd.s32 %v1603_v27, %v1598_v25  ;;  %v1609_v35 = vadd.s32 %v1603_v27, %v1600_v26 }
  0x8f   : > { %v1608_v36 = vadd.s32 %v1603_v27, %v1599_v28  ;;  %vm1612_vm2 = vcmp.lt.s32.totalorder %v1604_v29, 180  ;;  %v1611_v47 = vadd.s32 %v1603_v27, %v1602_v37  ;;  %v1610_v48 = vadd.s32 %v1603_v27, %v1601_v38 }
  0x90   : > { %2152 = vmatpush3.bf16.msra.mxu0 %v3028_v19  ;;  %vm1613_vm3 = vcmp.lt.s32.totalorder %v1605_v31, 180  ;;  %vm1614_vm4 = vcmp.lt.s32.totalorder %v1606_v32, 180  ;;  %vm1615_vm5 = vcmp.lt.s32.totalorder %v1607_v34, 180  ;;  %v1628_v41 = vsel %vm1612_vm2, %v1620_v30, 0.0 }
  0x91   : > { %v1630_v42 = vsel %vm1614_vm4, %v1622_v33, 0.0  ;;  %1638 = vperm.xlu0 %2283, %v1628_v41   ;;  %v1629_v43 = vsel %vm1613_vm3, %v1621_v39, 0.0  ;;  %v1631_v44 = vsel %vm1615_vm5, %v1623_v40, 0.0  ;;  %vm1617_vm6 = vcmp.lt.s32.totalorder %v1609_v35, 180 }
  0x92   : > { %1648 = vperm.xlu1 %2284, %v1630_v42   ;;  %vm1616_vm7 = vcmp.lt.s32.totalorder %v1608_v36, 180  ;;  %v1633_v49 = vsel %vm1617_vm6, %v1625_v45, 0.0  ;;  %vm1619_vm8 = vcmp.lt.s32.totalorder %v1611_v47, 180  ;;  %vm1618_vm9 = vcmp.lt.s32.totalorder %v1610_v48, 180 }
  0x93   : > { %v1632_v50 = vsel %vm1616_vm7, %v1624_v46, 0.0  ;;  %v1635_v53 = vsel %vm1619_vm8, %v1627_v51, 0.0  ;;  %v1634_v54 = vsel %vm1618_vm9, %v1626_v52, 0.0  ;;  %v444_v0 = vsub.s32 1, %v3032_v21 }
  0x94   : > { %v440_v1 = vsub.s32 0, %v3032_v21 }
  0x95   : > { %1643 = vperm.xlu0 %2283, %v1629_v43   ;;  %v3075_v20 = vrot.slane %v3070_v3, %v444_v0 }
  0x96   : > { %1653 = vperm.xlu1 %2284, %v1631_v44   ;;  %v3078_v23 = vrot.slane %v3070_v3, %v440_v1 }
  0x99   : > { %1658 = vperm.xlu0 %2283, %v1632_v50  }
  0x9a   : > { %1663 = vperm.xlu1 %2284, %v1633_v49  }
  0x9d   : > { %1668 = vperm.xlu0 %2283, %v1634_v54  }
  0x9e   : > { %1673 = vperm.xlu1 %2284, %v1635_v53  }
  0xe0   : > { %v967_v56 = vpop.f32.mrf.mxu1 }
  0xe2   : > { %v969_v57 = vpop.f32.mrf.mxu1 }
  0xe4   : > { %v971_v58 = vpop.f32.mrf.mxu1 }
  0xe6   : > { %v973_v59 = vpop.f32.mrf.mxu1 }
  0xe8   : > { %v977_v60 = vpop.f32.mrf.mxu1 }
  0xea   : > { %v979_v61 = vpop.f32.mrf.mxu1 }
  0xec   : > { %v981_v22 = vpop.f32.mrf.mxu1 }
  0xee   : > { %v983_v62 = vpop.f32.mrf.mxu1 }
  0xf0   : > { %v3059_v55 = vpop.f32.mrf.mxu1 }
  0xf2   : > { %v3061_v2 = vpop.f32.mrf.mxu1 }
  0xf4   : > { %v3063_v63 = vpop.f32.mrf.mxu1 }
  0xf6   : > { %v3072_v4 = vpop.f32.mrf.mxu1 }
  0xf8   : > { %v3080_v26 = vpop.f32.mrf.mxu1 }
  0xfa   : > { %v3085_v32 = vpop.f32.mrf.mxu1 }
  0xfc   : > { %v3088_v41 = vpop.f32.mrf.mxu1 }
  0xfe   : > { %v3093_v52 = vpop.f32.mrf.mxu1 }
 0x112   : > { %v894_v24 = vpop.f32.mrf.mxu0 }
 0x113   : > { %v895_v28 = vadd.f32 %v894_v24, %v3078_v23 }
 0x114   : > { %v896_v25 = vpop.f32.mrf.mxu0 }
 0x115   : > { %v897_v27 = vadd.f32 %v896_v25, %v3075_v20  ;;  %v968_v36 = vadd.f32 %v967_v56, %v895_v28 }
 0x116   : > { %v898_v29 = vpop.f32.mrf.mxu0 }
 0x117   : > { %v899_v30 = vadd.f32 %v898_v29, %v3078_v23  ;;  %v970_v33 = vadd.f32 %v969_v57, %v897_v27  ;;  %v1152_v45 = vmax.f32 %v968_v36, 0.0 }
 0x118   : > { %v900_v31 = vpop.f32.mrf.mxu0 }
 0x119   : > { %v972_v34 = vadd.f32 %v971_v58, %v899_v30  ;;  %v901_v35 = vadd.f32 %v900_v31, %v3075_v20  ;;  %v1153_v42 = vmax.f32 %v970_v33, 0.0 }
 0x11a   : > { %v904_v37 = vpop.f32.mrf.mxu0 }
 0x11b   : > { %v974_v38 = vadd.f32 %v973_v59, %v901_v35  ;;  %v1156_v39 = vmax.f32 %v972_v34, 0.0  ;;  %v905_v46 = vadd.f32 %v904_v37, %v3078_v23 }
 0x11c   : > { %v906_v40 = vpop.f32.mrf.mxu0 }
 0x11d   : > { %v1157_v43 = vmax.f32 %v974_v38, 0.0  ;;  %v907_v44 = vadd.f32 %v906_v40, %v3075_v20  ;;  %v1184_v50 = vpack.c.bf16 %v1156_v39, %v1152_v45  ;;  %v978_v57 = vadd.f32 %v977_v60, %v905_v46 }
 0x11e   : > { %v908_v47 = vpop.f32.mrf.mxu0  ;;  %v448_v40 = vsub.s32 2, %v3032_v21 }
 0x11f   : > { %v909_v48 = vadd.f32 %v908_v47, %v3078_v23  ;;  %v1185_v49 = vpack.c.bf16 %v1157_v43, %v1153_v42  ;;  %v980_v53 = vadd.f32 %v979_v61, %v907_v44  ;;  %v1160_v61 = vmax.f32 %v978_v57, 0.0 }
 0x120   : > { %v910_v51 = vpop.f32.mrf.mxu0  ;;  %v1040_v24 = vpop.f32.mrf.mxu1 }
 0x121   : > { %v982_v54 = vadd.f32 %v981_v22, %v909_v48  ;;  %v911_v56 = vadd.f32 %v910_v51, %v3075_v20  ;;  %1495 = vmatprep.mubr.bf16.mxu1 %v1185_v49  ;;  %v1161_v25 = vmax.f32 %v980_v53, 0.0  ;;  %v3117_v48 = vrot.slane %v3070_v3, %v448_v40 }
 0x122   : > { %v914_v58 = vpop.f32.mrf.mxu0  ;;  %1496 = vmatmul.mubr.bf16.vlgmr.msra.gmra.mxu1 %v1184_v50  ;;  %v1042_v30 = vpop.f32.mrf.mxu1 }
 0x123   : > { %v984_v59 = vadd.f32 %v983_v62, %v911_v56  ;;  %2185 = vmatpush3.bf16.msra.mxu1 %v2945_v5  ;;  %v1164_v0 = vmax.f32 %v982_v54, 0.0  ;;  %v915_v22 = vadd.f32 %v914_v58, %v3078_v23 }
 0x124   : > { %v916_v1 = vpop.f32.mrf.mxu0  ;;  %2178 = vmatprep.subr.bf16.mxu1 %v2951_v6  ;;  %v1044_v33 = vpop.f32.mrf.mxu1 }
 0x125   : > { %v1165_v27 = vmax.f32 %v984_v59, 0.0  ;;  %v917_v28 = vadd.f32 %v916_v1, %v3075_v20  ;;  %v1188_v62 = vpack.c.bf16 %v1164_v0, %v1160_v61  ;;  %v988_v36 = vadd.f32 %v3059_v55, %v915_v22 }
 0x126   : > { %v918_v29 = vpop.f32.mrf.mxu0  ;;  %v1046_v38 = vpop.f32.mrf.mxu1  ;;  %v452_v55 = vsub.s32 3, %v3032_v21  ;;  %v1045_v59 = vadd.f32 %v1044_v33, %v3117_v48 }
 0x127   : > { %v919_v60 = vadd.f32 %v918_v29, %v3078_v23  ;;  %v1189_v31 = vpack.c.bf16 %v1165_v27, %v1161_v25  ;;  %2186 = vmatpush3.bf16.msra.mxu1 %v2956_v7  ;;  %v990_v6 = vadd.f32 %v3061_v2, %v917_v28  ;;  %v1168_v44 = vmax.f32 %v988_v36, 0.0 }
 0x128   : > { %v920_v5 = vpop.f32.mrf.mxu0  ;;  %2179 = vmatprep.subr.bf16.mxu1 %v2963_v8  ;;  %v1050_v42 = vpop.f32.mrf.mxu1  ;;  %v3122_v51 = vrot.slane %v3070_v3, %v452_v55 }
 0x129   : > { %v992_v34 = vadd.f32 %v3063_v63, %v919_v60  ;;  %v921_v35 = vadd.f32 %v920_v5, %v3075_v20  ;;  %1503 = vmatprep.mubr.bf16.mxu1 %v1189_v31  ;;  %v1169_v2 = vmax.f32 %v990_v6, 0.0  ;;  %v1051_v33 = vadd.f32 %v1050_v42, %v3117_v48 }
 0x12a   : > { %v924_v37 = vpop.f32.mrf.mxu0  ;;  %1504 = vmatmul.mubr.bf16.gmra.mxu1 %v1188_v62 }
 0x12b   : > { %v994_v39 = vadd.f32 %v3072_v4, %v921_v35  ;;  %2187 = vmatpush3.bf16.msra.mxu1 %v2968_v9  ;;  %v1172_v7 = vmax.f32 %v992_v34, 0.0  ;;  %v925_v45 = vadd.f32 %v924_v37, %v3078_v23  ;;  %v1052_v4 = vpop.f32.mrf.mxu1 }
 0x12c   : > { %v926_v8 = vpop.f32.mrf.mxu0  ;;  %2180 = vmatprep.subr.bf16.mxu1 %v2975_v10  ;;  %v1053_v34 = vadd.f32 %v1052_v4, %v3122_v51 }
 0x12d   : > { %v1173_v63 = vmax.f32 %v994_v39, 0.0  ;;  %v927_v43 = vadd.f32 %v926_v8, %v3075_v20  ;;  %v1192_v49 = vpack.c.bf16 %v1172_v7, %v1168_v44  ;;  %v1054_v50 = vpop.f32.mrf.mxu1 }
 0x12e   : > { %v928_v46 = vpop.f32.mrf.mxu0 }
 0x12f   : > { %v929_v9 = vadd.f32 %v928_v46, %v3078_v23  ;;  %v1193_v47 = vpack.c.bf16 %v1173_v63, %v1169_v2  ;;  %2188 = vmatpush3.bf16.msra.mxu1 %v2980_v11  ;;  %v1000_v21 = vadd.f32 %v3085_v32, %v927_v43  ;;  %v998_v11 = vadd.f32 %v3080_v26, %v925_v45  ;;  %v1056_v56 = vpop.f32.mrf.mxu1 }
 0x130   : > { %v930_v10 = vpop.f32.mrf.mxu0  ;;  %2181 = vmatprep.subr.bf16.mxu1 %v2987_v12  ;;  %v1041_v12 = vadd.f32 %v1040_v24, %v3117_v48 }
 0x131   : > { %v1002_v53 = vadd.f32 %v3088_v41, %v929_v9  ;;  %v931_v23 = vadd.f32 %v930_v10, %v3075_v20  ;;  %1511 = vmatprep.mubr.bf16.mxu1 %v1193_v47  ;;  %v1060_v3 = vpop.f32.mrf.mxu1  ;;  %v1177_v41 = vmax.f32 %v1000_v21, 0.0  ;;  %v1043_v20 = vadd.f32 %v1042_v30, %v3122_v51 }
 0x132   : > { %v1113_v54 = vpop.f32.mrf.mxu0  ;;  %1512 = vmatmul.mubr.bf16.gmra.mxu1 %v1192_v49  ;;  %v1176_v0 = vmax.f32 %v998_v11, 0.0  ;;  %v1061_v44 = vadd.f32 %v1060_v3, %v3117_v48 }
 0x133   : > { %v1004_v57 = vadd.f32 %v3093_v52, %v931_v23  ;;  %2189 = vmatpush3.bf16.msra.mxu1 %v2992_v13  ;;  %v1180_v32 = vmax.f32 %v1002_v53, 0.0  ;;  %v1062_v25 = vpop.f32.mrf.mxu1  ;;  %v1047_v52 = vadd.f32 %v1046_v38, %v3122_v51  ;;  %v1114_v24 = vadd.f32 %v1113_v54, %v1041_v12 }
 0x134   : > { %v1115_v58 = vpop.f32.mrf.mxu0  ;;  %2182 = vmatprep.subr.bf16.mxu1 %v2999_v14  ;;  %v1057_v38 = vadd.f32 %v1056_v56, %v3122_v51  ;;  %v1063_v4 = vadd.f32 %v1062_v25, %v3122_v51 }
 0x135   : > { %v1181_v26 = vmax.f32 %v1004_v57, 0.0  ;;  %v1116_v27 = vadd.f32 %v1115_v58, %v1043_v20  ;;  %v1196_v22 = vpack.c.bf16 %v1180_v32, %v1176_v0  ;;  %v1064_v14 = vpop.f32.mrf.mxu1  ;;  %v1154_v62 = vmax.f32 %v1114_v24, 0.0 }
 0x136   : > { %v1117_v1 = vpop.f32.mrf.mxu0  ;;  %v1065_v9 = vadd.f32 %v1064_v14, %v3117_v48 }
 0x137   : > { %v1118_v13 = vadd.f32 %v1117_v1, %v1045_v59  ;;  %v1197_v28 = vpack.c.bf16 %v1181_v26, %v1177_v41  ;;  %2190 = vmatpush3.bf16.msra.mxu1 %v3004_v15  ;;  %v1155_v31 = vmax.f32 %v1116_v27, 0.0  ;;  %v1066_v15 = vpop.f32.mrf.mxu1 }
 0x138   : > { %v1119_v61 = vpop.f32.mrf.mxu0  ;;  %2183 = vmatprep.subr.bf16.mxu1 %v3011_v16  ;;  %v1055_v16 = vadd.f32 %v1054_v50, %v3117_v48  ;;  %v1067_v49 = vadd.f32 %v1066_v15, %v3122_v51 }
 0x139   : > { %v1120_v29 = vadd.f32 %v1119_v61, %v1047_v52  ;;  %1519 = vmatprep.mubr.bf16.mxu1 %v1197_v28  ;;  %v1158_v30 = vmax.f32 %v1118_v13, 0.0  ;;  %v1070_v8 = vpop.f32.mrf.mxu1 }
 0x13a   : > { %v1123_v60 = vpop.f32.mrf.mxu0  ;;  %1520 = vmatmul.mubr.bf16.gmra.mxu1 %v1196_v22  ;;  %v1071_v3 = vadd.f32 %v1070_v8, %v3117_v48 }
 0x13b   : > { %v1159_v5 = vmax.f32 %v1120_v29, 0.0  ;;  %2191 = vmatpush3.bf16.msra.mxu1 %v3016_v17  ;;  %v1186_v36 = vpack.c.bf16 %v1158_v30, %v1154_v62  ;;  %v1124_v17 = vadd.f32 %v1123_v60, %v1051_v33  ;;  %v1072_v46 = vpop.f32.mrf.mxu1 }
 0x13c   : > { %v1125_v6 = vpop.f32.mrf.mxu0  ;;  %2184 = vmatprep.subr.bf16.mxu1 %v3023_v18  ;;  %v1073_v59 = vadd.f32 %v1072_v46, %v3122_v51 }
 0x13d   : > { %v1187_v35 = vpack.c.bf16 %v1159_v5, %v1155_v31  ;;  %v1126_v39 = vadd.f32 %v1125_v6, %v1053_v34  ;;  %v1162_v55 = vmax.f32 %v1124_v17, 0.0  ;;  %v1074_v23 = vpop.f32.mrf.mxu1 }
 0x13e   : > { %v1127_v37 = vpop.f32.mrf.mxu0  ;;  %v1075_v26 = vadd.f32 %v1074_v23, %v3117_v48  ;;  %v1649_v23 = vpop.permute.xlu1 %1648 }
 0x13f   : > { %v1128_v7 = vadd.f32 %v1127_v37, %v1055_v16  ;;  %1560 = vmatprep.mubr.bf16.mxu0 %v1187_v35  ;;  %2192 = vmatpush3.bf16.msra.mxu1 %v3028_v19  ;;  %v1163_v63 = vmax.f32 %v1126_v39, 0.0  ;;  %v1076_v41 = vpop.f32.mrf.mxu1  ;;  %v3154_v37 = vld [vmem:[%s3241_s4] ss:$0 sm:$0xff]  ;;  %v1639_v39 = vpop.permute.xlu0 %1638 }
 0x140   : > { %v1129_v40 = vpop.f32.mrf.mxu0  ;;  %1561 = vmatmul.mubr.bf16.vlgmr.msra.gmra.mxu0 %v1186_v36  ;;  %v1077_v52 = vadd.f32 %v1076_v41, %v3122_v51 }
 0x141   : > { %v1130_v42 = vadd.f32 %v1129_v40, %v1057_v38  ;;  %v1166_v18 = vmax.f32 %v1128_v7, 0.0 }
 0x142   : > { %v1133_v2 = vpop.f32.mrf.mxu0 }
 0x143   : > { %v1167_v43 = vmax.f32 %v1130_v42, 0.0  ;;  %v1190_v19 = vpack.c.bf16 %v1166_v18, %v1162_v55  ;;  %v1134_v53 = vadd.f32 %v1133_v2, %v1061_v44 }
 0x144   : > { %v1135_v45 = vpop.f32.mrf.mxu0 }
 0x145   : > { %v1191_v47 = vpack.c.bf16 %v1167_v43, %v1163_v63  ;;  %v1136_v50 = vadd.f32 %v1135_v45, %v1063_v4  ;;  %v1170_v58 = vmax.f32 %v1134_v53, 0.0 }
 0x146   : > { %v1137_v10 = vpop.f32.mrf.mxu0 }
 0x147   : > { %v1138_v21 = vadd.f32 %v1137_v10, %v1065_v9  ;;  %1568 = vmatprep.mubr.bf16.mxu0 %v1191_v47  ;;  %v1171_v12 = vmax.f32 %v1136_v50, 0.0  ;;  %v1644_v9 = vpop.permute.xlu0 %1643 }
 0x148   : > { %v1139_v11 = vpop.f32.mrf.mxu0  ;;  %1569 = vmatmul.mubr.bf16.gmra.mxu0 %v1190_v19 }
 0x149   : > { %v1140_v54 = vadd.f32 %v1139_v11, %v1067_v49  ;;  %v1174_v56 = vmax.f32 %v1138_v21, 0.0 }
 0x14a   : > { %v1143_v57 = vpop.f32.mrf.mxu0 }
 0x14b   : > { %v1175_v32 = vmax.f32 %v1140_v54, 0.0  ;;  %v1194_v1 = vpack.c.bf16 %v1174_v56, %v1170_v58  ;;  %v1144_v28 = vadd.f32 %v1143_v57, %v1071_v3 }
 0x14c   : > { %v1145_v20 = vpop.f32.mrf.mxu0 }
 0x14d   : > { %v1195_v0 = vpack.c.bf16 %v1175_v32, %v1171_v12  ;;  %v1146_v27 = vadd.f32 %v1145_v20, %v1073_v59  ;;  %v1178_v30 = vmax.f32 %v1144_v28, 0.0  ;;  %v1654_v20 = vpop.permute.xlu1 %1653  ;;  %v1659_v28 = vpop.permute.xlu0 %1658 }
 0x14e   : > { %v1147_v25 = vpop.f32.mrf.mxu0 }
 0x14f   : > { %v1148_v13 = vadd.f32 %v1147_v25, %v1075_v26  ;;  %1576 = vmatprep.mubr.bf16.mxu0 %v1195_v0  ;;  %v1179_v14 = vmax.f32 %v1146_v27, 0.0 }
 0x150   : > { %v1149_v24 = vpop.f32.mrf.mxu0  ;;  %1577 = vmatmul.mubr.bf16.gmra.mxu0 %v1194_v1 }
 0x151   : > { %v1150_v61 = vadd.f32 %v1149_v24, %v1077_v52  ;;  %v1182_v22 = vmax.f32 %v1148_v13, 0.0 }
 0x153   : > { %v1183_v29 = vmax.f32 %v1150_v61, 0.0  ;;  %v1198_v31 = vpack.c.bf16 %v1182_v22, %v1178_v30 }
 0x155   : > { %v1199_v60 = vpack.c.bf16 %v1183_v29, %v1179_v14 }
 0x157   : > { %1584 = vmatprep.mubr.bf16.mxu1 %v1199_v60 }
 0x158   : > { %1585 = vmatmul.mubr.bf16.vlgmr.msra.gmra.mxu1 %v1198_v31 }
 0x1e2   : > { %v2113_v48 = vpop.f32.mrf.mxu1 }
 0x1e4   : > { %v2114_v5 = vpop.f32.mrf.mxu1 }
 0x1e5   : > { %v2115_v36 = vadd.f32 %v2114_v5, %v2113_v48  ;;  %v1664_v5 = vpop.permute.xlu1 %1663 }
 0x1e6   : > { %v2116_v62 = vpop.f32.mrf.mxu1 }
 0x1e7   : > { %v1498_v40 = vadd.f32 %v2115_v36, %v3154_v37 }
 0x1e8   : > { %v2117_v51 = vpop.f32.mrf.mxu1 }
 0x1e9   : > { %v2118_v8 = vadd.f32 %v2117_v51, %v2116_v62 }
 0x1ea   : > { %v2119_v33 = vpop.f32.mrf.mxu1 }
 0x1eb   : > { %v1501_v55 = vadd.f32 %v2118_v8, %v3154_v37 }
 0x1ec   : > { %v2120_v6 = vpop.f32.mrf.mxu1 }
 0x1ed   : > { %v2121_v44 = vadd.f32 %v2120_v6, %v2119_v33 }
 0x1ee   : > { %v2122_v15 = vpop.f32.mrf.mxu1 }
 0x1ef   : > { %v1506_v49 = vadd.f32 %v2121_v44, %v3154_v37 }
 0x1f0   : > { %v2123_v34 = vpop.f32.mrf.mxu1 }
 0x1f1   : > { %v2124_v50 = vadd.f32 %v2123_v34, %v2122_v15 }
 0x1f2   : > { %v2125_v16 = vpop.f32.mrf.mxu1 }
 0x1f3   : > { %v1509_v12 = vadd.f32 %v2124_v50, %v3154_v37 }
 0x1f4   : > { %v2126_v35 = vpop.f32.mrf.mxu1 }
 0x1f5   : > { %v2127_v32 = vadd.f32 %v2126_v35, %v2125_v16  ;;  %v1669_v35 = vpop.permute.xlu0 %1668 }
 0x1f6   : > { %v2128_v7 = vpop.f32.mrf.mxu1 }
 0x1f7   : > { %v1514_v1 = vadd.f32 %v2127_v32, %v3154_v37 }
 0x1f8   : > { %v2129_v63 = vpop.f32.mrf.mxu1 }
 0x1f9   : > { %v2130_v25 = vadd.f32 %v2129_v63, %v2128_v7 }
 0x1fa   : > { %v2131_v19 = vpop.f32.mrf.mxu1 }
 0x1fb   : > { %v1517_v14 = vadd.f32 %v2130_v25, %v3154_v37 }
 0x1fc   : > { %v2132_v56 = vpop.f32.mrf.mxu1 }
 0x1fd   : > { %v2133_v29 = vadd.f32 %v2132_v56, %v2131_v19 }
 0x1fe   : > { %v2134_v26 = vpop.f32.mrf.mxu1 }
 0x1ff   : > { %v1522_v51 = vadd.f32 %v2133_v29, %v3154_v37 }
 0x200   : > { %v2153_v38 = vpop.f32.mrf.mxu0  ;;  %v2135_v61 = vpop.f32.mrf.mxu1 }
 0x201   : > { %v2136_v33 = vadd.f32 %v2135_v61, %v2134_v26 }
 0x202   : > { %v2154_v17 = vpop.f32.mrf.mxu0 }
 0x203   : > { %v2155_v42 = vadd.f32 %v2154_v17, %v2153_v38  ;;  %v1525_v38 = vadd.f32 %v2136_v33, %v3154_v37 }
 0x204   : > { %v2156_v18 = vpop.f32.mrf.mxu0 }
 0x205   : > { %v1563_v2 = vadd.f32 %v2155_v42, %v1498_v40  ;;  %v1674_v40 = vpop.permute.xlu1 %1673 }
 0x206   : > { %v2157_v43 = vpop.f32.mrf.mxu0 }
 0x207   : > { %v1676_v45 = vmul.f32 %v1639_v39, %v1563_v2  ;;  %v2158_v46 = vadd.f32 %v2157_v43, %v2156_v18 }
 0x208   : > { %v2159_v4 = vpop.f32.mrf.mxu0 }
 0x209   : > { %1684 = vst [vmem:[%s3159_s21] sm:$0xff] %v1676_v45  ;;  %v1566_v47 = vadd.f32 %v2158_v46, %v1501_v55 }
 0x20a   : > { %v2160_v10 = vpop.f32.mrf.mxu0 }
 0x20b   : > { %v1677_v21 = vmul.f32 %v1644_v9, %v1566_v47  ;;  %v2161_v53 = vadd.f32 %v2160_v10, %v2159_v4 }
 0x20c   : > { %v2162_v11 = vpop.f32.mrf.mxu0 }
 0x20d   : > { %1685 = vst [vmem:[%s3159_s21 + $0x8] sm:$0xff] %v1677_v21  ;;  %v1571_v54 = vadd.f32 %v2161_v53, %v1506_v49 }
 0x20e   : > { %v2163_v57 = vpop.f32.mrf.mxu0 }
 0x20f   : > { %v1678_v58 = vmul.f32 %v1649_v23, %v1571_v54  ;;  %v2164_v3 = vadd.f32 %v2163_v57, %v2162_v11 }
 0x210   : > { %v2165_v41 = vpop.f32.mrf.mxu0 }
 0x211   : > { %1686 = vst [vmem:[%s3159_s21 + $0x10] sm:$0xff] %v1678_v58  ;;  %v1574_v59 = vadd.f32 %v2164_v3, %v1509_v12 }
 0x212   : > { %v2166_v0 = vpop.f32.mrf.mxu0 }
 0x213   : > { %v1679_v52 = vmul.f32 %v1654_v20, %v1574_v59  ;;  %v2167_v27 = vadd.f32 %v2166_v0, %v2165_v41 }
 0x214   : > { %v2168_v13 = vpop.f32.mrf.mxu0 }
 0x215   : > { %1687 = vst [vmem:[%s3159_s21 + $0x18] sm:$0xff] %v1679_v52  ;;  %v1579_v24 = vadd.f32 %v2167_v27, %v1514_v1 }
 0x216   : > { %v2169_v22 = vpop.f32.mrf.mxu0 }
 0x217   : > { %v1680_v30 = vmul.f32 %v1659_v28, %v1579_v24  ;;  %v2170_v60 = vadd.f32 %v2169_v22, %v2168_v13 }
 0x218   : > { %v2171_v31 = vpop.f32.mrf.mxu1 }
 0x219   : > { %1688 = vst [vmem:[%s3159_s21 + $0x20] sm:$0xff] %v1680_v30  ;;  %v1582_v48 = vadd.f32 %v2170_v60, %v1517_v14 }
 0x21a   : > { %v2172_v62 = vpop.f32.mrf.mxu1 }
 0x21b   : > { %v1681_v6 = vmul.f32 %v1664_v5, %v1582_v48  ;;  %v2173_v15 = vadd.f32 %v2172_v62, %v2171_v31 }
 0x21c   : > { %v2174_v34 = vpop.f32.mrf.mxu1 }
 0x21d   : > { %1689 = vst [vmem:[%s3159_s21 + $0x28] sm:$0xff] %v1681_v6  ;;  %v1587_v16 = vadd.f32 %v2173_v15, %v1522_v51 }
 0x21e   : > { %v2175_v36 = vpop.f32.mrf.mxu1 }
 0x21f   : > { %v1682_v39 = vmul.f32 %v1669_v35, %v1587_v16  ;;  %v2176_v7 = vadd.f32 %v2175_v36, %v2174_v34 }
 0x221   : > { %1690 = vst [vmem:[%s3159_s21 + $0x30] sm:$0xff] %v1682_v39  ;;  %v1590_v17 = vadd.f32 %v2176_v7, %v1525_v38  ;;  %1698 = sbr.rel (!%p2580_p4) target bundleno = 589 (0x24d), region = 48 }
 0x223   : > { %v1683_v8 = vmul.f32 %v1674_v40, %v1590_v17 }
 0x225   : > { %1691 = vst [vmem:[%s3159_s21 + $0x38] sm:$0xff] %v1683_v8 }
 0x226   : > { %s3252_s23 = smov (!%p1701_p8, %s1700_s23), 8 }
 0x227   : > { %s2079_s9 = sshll.u32 %s3252_s23, 7 }
 0x228   : > { %p2082_p9 = scmp.eq.s32.totalorder %s2079_s9, 0 }
 0x229   : > { %s3189_s11 = sshrl.u32 (!%p2082_p9), %s3252_s23, 3 }
 0x22a   : > { %1709 = sbr.rel (%p2082_p9) target bundleno = 589 (0x24d), region = 52  ;;  %p2083_p10 = scmp.le.s32.totalorder (!%p2082_p9), %s3189_s11, 0 }
 0x22f   : > { %1898 = sbr.rel (%p2083_p10) target bundleno = 572 (0x23c), region = 131  ;;  %s3245_s24 = smov (!%p2083_p10), %s3183_s7 }
 0x230   : > { %s3246_s29 = smov (!%p2083_p10), %s3159_s21  ;;  %s3198_s10 = smov (!%p2083_p10), 0  }
 0x231   : > { %s3200_s12 = smov (!%p2083_p10), 0  }
 0x234 LB: >> { %v1786_v37 = vld [vmem:[%s2493_s29] sm:$0xff]  ;;  %v1788_v42 = vld [vmem:[%s2493_s29 + $0x8] sm:$0xff]  ;;  %v1790_v18 = vld [vmem:[%s2493_s29 + $0x10] sm:$0xff]  ;;  %s1802_s13 = sadd.s32 1, %s2497_s10  ;;  %s1780_s12 = sadd.s32 1, %s2501_s12   ;;  %s2501_s12 = sphi %s3200_s12, %s1780_s12   ;;  %s2497_s10 = sphi %s3198_s10, %s3247_s10   ;;  %s2493_s29 = sphi %s3246_s29, %s1807_s29   ;;  %s2489_s24 = sphi %s3245_s24, %s1808_s24  }
 0x235   : >> { %1787 = vst [vmem:[%s2489_s24] sm:$0xff] %v1786_v37  ;;  %1789 = vst [vmem:[%s2489_s24 + $0x8] sm:$0xff] %v1788_v42  ;;  %v1792_v2 = vld [vmem:[%s2493_s29 + $0x18] sm:$0xff]  ;;  %v1794_v63 = vld [vmem:[%s2493_s29 + $0x20] sm:$0xff]  ;;  %p1803_p11 = scmp.ge.s32.totalorder %s1802_s13, %s3189_s11  ;;  %p1779_p12 = scmp.ge.s32.totalorder %s1780_s12, %s3189_s11 }
 0x236   : >> { %1791 = vst [vmem:[%s2489_s24 + $0x10] sm:$0xff] %v1790_v18  ;;  %v1796_v43 = vld [vmem:[%s2493_s29 + $0x28] sm:$0xff]  ;;  %1793 = vst [vmem:[%s2489_s24 + $0x18] sm:$0xff] %v1792_v2  ;;  %v1798_v55 = vld [vmem:[%s2493_s29 + $0x30] sm:$0xff] }
 0x237   : >> { %1795 = vst [vmem:[%s2489_s24 + $0x20] sm:$0xff] %v1794_v63  ;;  %1797 = vst [vmem:[%s2489_s24 + $0x28] sm:$0xff] %v1796_v43  ;;  %v1800_v44 = vld [vmem:[%s2493_s29 + $0x38] sm:$0xff]  ;;  %s3254_s13 = smov (%p1803_p11, %s1802_s13), 0  ;;  %1782 = sbr.rel (!%p1779_p12) target bundleno = 564 (0x234), region = 137 }
 0x238   : >> { %1799 = vst [vmem:[%s2489_s24 + $0x30] sm:$0xff] %v1798_v55  ;;  %1801 = vst [vmem:[%s2489_s24 + $0x38] sm:$0xff] %v1800_v44  ;;  %s2084_s8 = sshll.u32 %s3254_s13, 6  ;;  %s3247_s10 = smov %s3254_s13 }
 0x239   : >> { %s1807_s29 = scalar_lea.vmem %s3159_s21, %s2084_s8 [#allocation2]   ;;  %s1808_s24 = scalar_lea.vmem %s3183_s7, %s2084_s8  }
 0x23c PF: > { %s3219_s14 = sand.u32 7, %s3252_s23   ;;  %s2095_s15 = sshll.u32 %s3189_s11, 6 }
 0x23d   : > { %s1813_s17 = scalar_lea.vmem %s3159_s21, %s2095_s15 [#allocation2]   ;;  %s1815_s16 = scalar_lea.vmem %s3183_s7, %s2095_s15  }
 0x23e   : > { %p2089_p13 = scmp.le.s32.totalorder %s3219_s14, 0 }
 0x23f   : > { %s2503_s27 = smov (!%p2089_p13), %s1815_s16   ;;  %s2507_s18 = smov (!%p2089_p13), %s1813_s17  }
 0x240   : > { %1912 = sbr.rel (%p2089_p13) target bundleno = 589 (0x24d), region = 142  ;;  %s2511_s19 = smov (!%p2089_p13), 0  }
 0x241   : > { %s2515_s20 = smov (!%p2089_p13), 0  }
 0x245 LB: >> { %v1825_v45 = vld [vmem:[%s2509_s18] sm:$0xff]  ;;  %s1827_s23 = sadd.s32 1, %s2513_s19  ;;  %s1819_s20 = sadd.s32 1, %s2517_s20   ;;  %s2517_s20 = sphi %s2515_s20, %s1819_s20   ;;  %s2513_s19 = sphi %s2511_s19, %s2512_s19   ;;  %s2509_s18 = sphi %s2507_s18, %s1832_s18   ;;  %s2505_s27 = sphi %s2503_s27, %s1833_s27  }
 0x246   : >> { %1826 = vst [vmem:[%s2505_s27] sm:$0xff] %v1825_v45  ;;  %p1828_p0 = scmp.ge.s32.totalorder %s1827_s23, %s3219_s14  ;;  %p1818_p1 = scmp.ge.s32.totalorder %s1819_s20, %s3219_s14 }
 0x248   : >> { %s3256_s23 = smov (%p1828_p0, %s1827_s23), 0  ;;  %1821 = sbr.rel (!%p1818_p1) target bundleno = 581 (0x245), region = 148 }
 0x249   : >> { %s2090_s21 = sshll.u32 %s3256_s23, 3  ;;  %s2512_s19 = smov %s3256_s23  }
 0x24a   : >> { %s1832_s18 = scalar_lea.vmem %s1813_s17, %s2090_s21 [#allocation2]   ;;  %s1833_s27 = scalar_lea.vmem %s1815_s16, %s2090_s21  }
 0x24d PF: > { %p13_p2 = scmp.ge.s32.totalorder %s2570_s25, 5   ;;  %s3248_s21 = smov %s2481_s22 }
 0x24e   : > { %s3249_s22 = smov %s2578_s28  ;;  %s3250_s23 = smov %s2570_s25 }
 0x24f   :  { %15 = sbr.rel (!%p13_p2) target bundleno = 2 (0x2), region = 159 }

</bundles_post_ra>
